<compile_context>
chip_gen: v7x
topology: tpu7x:2x2x1
jax: 0.10.0
libtpu: 0.0.40
codegen_flags: <defaults>
</compile_context>

<pallas_src>
import functools

import jax
import jax.numpy as jnp
from jax.experimental import pallas as pl
from jax.experimental.pallas import tpu as pltpu


_SELU_ALPHA = 1.6732632423543772
_SELU_SCALE = 1.0507009873554805


def _selu(x):
    return _SELU_SCALE * jnp.where(x > 0, x, _SELU_ALPHA * (jnp.exp(x) - 1.0))


def _sigmoid(x):
    return 1.0 / (1.0 + jnp.exp(-x))


def _luong_gate_kernel(h_ref, ctx_ref, m_ref,
                       w_in_ref, b_in_ref,
                       wh_s1_ref, b_s1_ref,
                       wx_frv_ref, w_mm_ref,
                       w2_ref, b2_ref,
                       out_ref, attn_ref, mem_ref,
                       *, hops, hidden):
    H = hidden
    f32 = jnp.float32

    h = h_ref[...]                       # (BT, H)   native dtype (MXU-friendly)
    ctx = ctx_ref[...]                   # (BT, L, H)
    m = m_ref[...].astype(f32)           # (BT, H)

    # ---- attention hops: x <- softmax(context @ linear_in(x)) @ context + x --
    x = h.astype(f32)
    weights = None
    for _ in range(hops):                # hops is a static Python int (unrolled)
        gamma = (jnp.dot(x, w_in_ref[...], preferred_element_type=f32)
                 + b_in_ref[...])                                    # (BT, H)
        # per-row mat-vec: scores[b, l] = <ctx[b, l, :], gamma[b, :]>
        scores = jnp.sum(ctx * gamma[:, None, :], axis=-1)           # (BT, L) f32
        s_max = jnp.max(scores, axis=-1, keepdims=True)
        e = jnp.exp(scores - s_max)
        denom = jnp.sum(e, axis=-1, keepdims=True)
        # exact reciprocal: attn weights are a returned, tightly-checked output;
        # approx=True (EUP vrcp) is a near-free swap when ~1e-4 rel err is fine.
        weights = e * pl.reciprocal(denom, approx=False)             # (BT, L)
        c_t = jnp.sum(weights[:, :, None] * ctx, axis=1)             # (BT, H)
        x = c_t + x
    attn_ref[...] = weights.astype(attn_ref.dtype)

    # ---- shared h-projection for ALL five stage-1 (2H -> H) linears ----------
    # cat([a, h], 1) @ W1.T == a @ W1[:, :H].T + h @ W1[:, H:].T ; the h-halves
    # (and every stage-1 bias) are fused into a single (H, 5H) matmul.
    h_proj = (jnp.dot(h, wh_s1_ref[...], preferred_element_type=f32)
              + b_s1_ref[...])                                       # (BT, 5H)

    # ---- feed / remove / feed_vec stage 1 (data halves fused along N) --------
    s_frv = _selu(jnp.dot(x, wx_frv_ref[...], preferred_element_type=f32)
                  + h_proj[:, 0:3 * H])                              # (BT, 3H)
    s_feed = s_frv[:, 0 * H:1 * H]
    s_remove = s_frv[:, 1 * H:2 * H]
    fv = s_frv[:, 2 * H:3 * H]

    feed_gate = _sigmoid(jnp.dot(s_feed, w2_ref[0], preferred_element_type=f32)
                         + b2_ref[0])
    remove_gate = _sigmoid(jnp.dot(s_remove, w2_ref[1], preferred_element_type=f32)
                           + b2_ref[1])

    memory = remove_gate * m + feed_gate * fv                        # (BT, H)
    mem_ref[...] = memory.astype(mem_ref.dtype)

    # ---- mem_gate(cat([memory, h], 1)) ----------------------------------------
    s_mem = _selu(jnp.dot(memory, w_mm_ref[0], preferred_element_type=f32)
                  + h_proj[:, 3 * H:4 * H])
    mem_gate = _sigmoid(jnp.dot(s_mem, w2_ref[2], preferred_element_type=f32)
                        + b2_ref[2])

    # ---- linear_out(cat([mem_gate * x, h], 1)) --------------------------------
    m_x = mem_gate * x
    s_out = _selu(jnp.dot(m_x, w_mm_ref[1], preferred_element_type=f32)
                  + h_proj[:, 4 * H:5 * H])
    output = _selu(jnp.dot(s_out, w2_ref[3], preferred_element_type=f32)
                   + b2_ref[3])
    out_ref[...] = output.astype(out_ref.dtype)


def luong_gate_attention_forward(h, context, m, params, *, embs=None,
                                 hops=1, block_b=8):
    """Eval-mode forward of LuongGateAttention as a single fused Pallas kernel.

    h, m   : (B, H)     context : (B, L, H)
    params : dict of PyTorch-layout weights (see __main__ for keys).
    `embs` is accepted for API fidelity but unused (as in the PyTorch forward).
    Returns (output (B, H), attn_weights (B, L), memory (B, H)).
    """
    del embs
    assert hops >= 1
    B, H = h.shape
    _, L, _ = context.shape
    dt = h.dtype

    # ---- pre-pack / pre-transpose all weights (free XLA plumbing) ------------
    def t(w):  # nn.Linear (out, in) -> (in, out), so the kernel does plain x @ W
        return jnp.transpose(w)

    # stage-1 (2H -> H) linears in the order [feed, remove, feed_vec, mem_gate, out]
    s1 = [(params["feed_w1"], params["feed_b1"]),
          (params["remove_w1"], params["remove_b1"]),
          (params["feed_vec_w1"], params["feed_vec_b1"]),
          (params["mem_gate_w1"], params["mem_gate_b1"]),
          (params["out_w1"], params["out_b1"])]
    wh_s1 = jnp.concatenate([t(w[:, H:]) for w, _ in s1], axis=1)        # (H, 5H)
    b_s1 = jnp.concatenate([b for _, b in s1]).reshape(1, 5 * H)         # (1, 5H)
    wx_frv = jnp.concatenate([t(w[:, :H]) for w, _ in s1[:3]], axis=1)   # (H, 3H)
    w_mm = jnp.stack([t(s1[3][0][:, :H]), t(s1[4][0][:, :H])])           # (2, H, H)

    # stage-2 (H -> H) linears: [feed, remove, mem_gate, linear_out]
    w2 = jnp.stack([t(params["feed_w2"]), t(params["remove_w2"]),
                    t(params["mem_gate_w2"]), t(params["out_w2"])])      # (4, H, H)
    b2 = jnp.stack([params["feed_b2"], params["remove_b2"],
                    params["mem_gate_b2"], params["out_b2"]])[:, None, :]  # (4, 1, H)

    w_in = t(params["linear_in_w"])                                      # (H, H)
    b_in = params["linear_in_b"].reshape(1, H)

    # ---- batch tiling: several rows per grid step -----------------------------
    bt = min(block_b, B)
    b_pad = ((B + bt - 1) // bt) * bt
    if b_pad != B:
        pad = b_pad - B
        h = jnp.pad(h, ((0, pad), (0, 0)))
        context = jnp.pad(context, ((0, pad), (0, 0), (0, 0)))
        m = jnp.pad(m, ((0, pad), (0, 0)))
    grid = (b_pad // bt,)

    kernel = functools.partial(_luong_gate_kernel, hops=hops, hidden=H)

    # advisory cost estimate so XLA schedules the custom call sensibly
    flops = int(b_pad * (2 * H * H * (14 + hops) + hops * 4 * L * H))
    transcendentals = int(b_pad * (hops * L + 9 * H))
    bytes_accessed = int(
        (h.size + m.size + context.size + 2 * b_pad * H + b_pad * L) * dt.itemsize
        + (w_in.size + wh_s1.size + wx_frv.size + w_mm.size + w2.size)
        * w_in.dtype.itemsize
        + (b_in.size + b_s1.size + b2.size) * b_in.dtype.itemsize)

    out, attn, memory = pl.pallas_call(
        kernel,
        out_shape=(
            jax.ShapeDtypeStruct((b_pad, H), dt),
            jax.ShapeDtypeStruct((b_pad, L), dt),   # attn weights in input dtype
            jax.ShapeDtypeStruct((b_pad, H), dt),
        ),
        grid_spec=pltpu.PrefetchScalarGridSpec(
            num_scalar_prefetch=0,
            grid=grid,
            in_specs=[
                pl.BlockSpec((bt, H), lambda i: (i, 0)),          # h
                pl.BlockSpec((bt, L, H), lambda i: (i, 0, 0)),    # context
                pl.BlockSpec((bt, H), lambda i: (i, 0)),          # m
                pl.BlockSpec((H, H), lambda i: (0, 0)),           # linear_in W^T
                pl.BlockSpec((1, H), lambda i: (0, 0)),           # linear_in b
                pl.BlockSpec((H, 5 * H), lambda i: (0, 0)),       # stage-1 h-halves (fused)
                pl.BlockSpec((1, 5 * H), lambda i: (0, 0)),       # stage-1 biases  (fused)
                pl.BlockSpec((H, 3 * H), lambda i: (0, 0)),       # feed/remove/feed_vec x-halves
                pl.BlockSpec((2, H, H), lambda i: (0, 0, 0)),     # mem_gate / linear_out data-halves
                pl.BlockSpec((4, H, H), lambda i: (0, 0, 0)),     # stage-2 weights
                pl.BlockSpec((4, 1, H), lambda i: (0, 0, 0)),     # stage-2 biases
            ],
            out_specs=[
                pl.BlockSpec((bt, H), lambda i: (i, 0)),          # output
                pl.BlockSpec((bt, L), lambda i: (i, 0)),          # attn weights
                pl.BlockSpec((bt, H), lambda i: (i, 0)),          # memory
            ],
        ),
        compiler_params=pltpu.CompilerParams(
            dimension_semantics=("parallel",)),
        cost_estimate=pl.CostEstimate(
            flops=flops, transcendentals=transcendentals,
            bytes_accessed=bytes_accessed),
    )(h, context, m, w_in, b_in, wh_s1, b_s1, wx_frv, w_mm, w2, b2)

    return out[:B], attn[:B], memory[:B]


def _reference_forward(h, context, m, params, hops=1):
    # Pure-JAX reference mirroring the PyTorch forward (dropout = identity).
    x = h
    weights = None
    for _ in range(hops):
        gamma = x @ params["linear_in_w"].T + params["linear_in_b"]      # (B, H)
        weights = jnp.einsum("blh,bh->bl", context, gamma)
        weights = jax.nn.softmax(weights, axis=1)
        c_t = jnp.einsum("bl,blh->bh", weights, context)
        x = c_t + x

    xh = jnp.concatenate([x, h], axis=1)

    def two_layer(inp, w1, b1, w2, b2, act2):
        s = jax.nn.selu(inp @ w1.T + b1)
        return act2(s @ w2.T + b2)

    feed_gate = two_layer(xh, params["feed_w1"], params["feed_b1"],
                          params["feed_w2"], params["feed_b2"], jax.nn.sigmoid)
    remove_gate = two_layer(xh, params["remove_w1"], params["remove_b1"],
                            params["remove_w2"], params["remove_b2"], jax.nn.sigmoid)
    fv = jax.nn.selu(xh @ params["feed_vec_w1"].T + params["feed_vec_b1"])
    memory = remove_gate * m + feed_gate * fv
    mh = jnp.concatenate([memory, h], axis=1)
    mem_gate = two_layer(mh, params["mem_gate_w1"], params["mem_gate_b1"],
                         params["mem_gate_w2"], params["mem_gate_b2"], jax.nn.sigmoid)
    m_x = mem_gate * x
    oh = jnp.concatenate([m_x, h], axis=1)
    output = two_layer(oh, params["out_w1"], params["out_b1"],
                       params["out_w2"], params["out_b2"], jax.nn.selu)
    return output, weights, memory


if __name__ == "__main__":
    key = jax.random.PRNGKey(0)
    B, L, H = 2, 8, 32
    keys = iter(jax.random.split(key, 32))

    h = jax.random.normal(next(keys), (B, H), dtype=jnp.float32)
    context = jax.random.normal(next(keys), (B, L, H), dtype=jnp.float32)
    m = jax.random.normal(next(keys), (B, H), dtype=jnp.float32)

    def linear_init(k, out_dim, in_dim):
        # deterministic nn.Linear-style init: U(-1/sqrt(fan_in), 1/sqrt(fan_in))
        kw, kb = jax.random.split(k)
        bound = 1.0 / (in_dim ** 0.5)
        w = jax.random.uniform(kw, (out_dim, in_dim), minval=-bound, maxval=bound,
                               dtype=jnp.float32)
        b = jax.random.uniform(kb, (out_dim,), minval=-bound, maxval=bound,
                               dtype=jnp.float32)
        return w, b

    params = {}
    params["linear_in_w"], params["linear_in_b"] = linear_init(next(keys), H, H)
    for name in ("feed", "remove", "mem_gate", "out"):
        params[f"{name}_w1"], params[f"{name}_b1"] = linear_init(next(keys), H, 2 * H)
        params[f"{name}_w2"], params[f"{name}_b2"] = linear_init(next(keys), H, H)
    params["feed_vec_w1"], params["feed_vec_b1"] = linear_init(next(keys), H, 2 * H)

    # TODO(synk): train-mode nn.Dropout (stochastic masking) is not implemented;
    # the kernel is the eval-mode forward (dropout == identity).
    out, attn, memory = luong_gate_attention_forward(h, context, m, params, hops=1)
    out = jax.block_until_ready(out)
    attn = jax.block_until_ready(attn)
    memory = jax.block_until_ready(memory)

    out_ref, attn_ref, mem_ref = _reference_forward(h, context, m, params, hops=1)
    assert jnp.allclose(attn, attn_ref, atol=2e-5, rtol=2e-5), "attn mismatch"
    assert jnp.allclose(memory, mem_ref, atol=2e-5, rtol=2e-5), "memory mismatch"
    assert jnp.allclose(out, out_ref, atol=2e-5, rtol=2e-5), "output mismatch"

    print("KERNEL_OK")
</pallas_src>

<mosaic_0001>
module attributes {stable_mosaic.version = 11 : i64} {
  func.func @_luong_gate_kernel(%arg0: i32, %arg1: memref<2x32xf32, #tpu.memory_space<vmem>>, %arg2: memref<2x8x32xf32, #tpu.memory_space<vmem>>, %arg3: memref<2x32xf32, #tpu.memory_space<vmem>>, %arg4: memref<32x32xf32, #tpu.memory_space<vmem>>, %arg5: memref<1x32xf32, #tpu.memory_space<vmem>>, %arg6: memref<32x160xf32, #tpu.memory_space<vmem>>, %arg7: memref<1x160xf32, #tpu.memory_space<vmem>>, %arg8: memref<32x96xf32, #tpu.memory_space<vmem>>, %arg9: memref<2x32x32xf32, #tpu.memory_space<vmem>>, %arg10: memref<4x32x32xf32, #tpu.memory_space<vmem>>, %arg11: memref<4x1x32xf32, #tpu.memory_space<vmem>>, %arg12: memref<2x32xf32, #tpu.memory_space<vmem>>, %arg13: memref<2x8xf32, #tpu.memory_space<vmem>>, %arg14: memref<2x32xf32, #tpu.memory_space<vmem>>) attributes {dimension_semantics = [#tpu.dimension_semantics<parallel>], iteration_bounds = array<i64: 1>, scalar_prefetch = 0 : i64, scratch_operands = 0 : i64, tpu.core_type = #tpu.core_type<tc>, window_params = [{transform_indices = @transform_0, window_bounds = array<i64: 2, 32>}, {transform_indices = @transform_1, window_bounds = array<i64: 2, 8, 32>}, {transform_indices = @transform_2, window_bounds = array<i64: 2, 32>}, {pipeline_mode = #tpu.pipeline_mode<synchronous>, transform_indices = @transform_3, window_bounds = array<i64: 32, 32>}, {pipeline_mode = #tpu.pipeline_mode<synchronous>, transform_indices = @transform_4, window_bounds = array<i64: 1, 32>}, {pipeline_mode = #tpu.pipeline_mode<synchronous>, transform_indices = @transform_5, window_bounds = array<i64: 32, 160>}, {pipeline_mode = #tpu.pipeline_mode<synchronous>, transform_indices = @transform_6, window_bounds = array<i64: 1, 160>}, {pipeline_mode = #tpu.pipeline_mode<synchronous>, transform_indices = @transform_7, window_bounds = array<i64: 32, 96>}, {pipeline_mode = #tpu.pipeline_mode<synchronous>, transform_indices = @transform_8, window_bounds = array<i64: 2, 32, 32>}, {pipeline_mode = #tpu.pipeline_mode<synchronous>, transform_indices = @transform_9, window_bounds = array<i64: 4, 32, 32>}, {pipeline_mode = #tpu.pipeline_mode<synchronous>, transform_indices = @transform_10, window_bounds = array<i64: 4, 1, 32>}, {transform_indices = @transform_11, window_bounds = array<i64: 2, 32>}, {transform_indices = @transform_12, window_bounds = array<i64: 2, 8>}, {transform_indices = @transform_13, window_bounds = array<i64: 2, 32>}]} {
    %c0 = arith.constant 0 : index
    %c0_0 = arith.constant 0 : index
    %0 = vector.load %arg1[%c0, %c0_0] : memref<2x32xf32, #tpu.memory_space<vmem>>, vector<2x32xf32>
    %c0_1 = arith.constant 0 : index
    %c0_2 = arith.constant 0 : index
    %c0_3 = arith.constant 0 : index
    %1 = vector.load %arg2[%c0_1, %c0_2, %c0_3] : memref<2x8x32xf32, #tpu.memory_space<vmem>>, vector<2x8x32xf32>
    %c0_4 = arith.constant 0 : index
    %c0_5 = arith.constant 0 : index
    %2 = vector.load %arg3[%c0_4, %c0_5] : memref<2x32xf32, #tpu.memory_space<vmem>>, vector<2x32xf32>
    %c0_6 = arith.constant 0 : index
    %c0_7 = arith.constant 0 : index
    %3 = vector.load %arg4[%c0_6, %c0_7] : memref<32x32xf32, #tpu.memory_space<vmem>>, vector<32x32xf32>
    %cst = arith.constant dense<0.000000e+00> : vector<2x32xf32>
    %4 = tpu.matmul %0, %3, %cst {dimension_numbers = #tpu.dot_dimension_numbers<[1], [0], [0], [1], [0, 0, 1, 1], [], []>} : vector<2x32xf32>, vector<32x32xf32>, vector<2x32xf32> -> vector<2x32xf32>
    %c0_8 = arith.constant 0 : index
    %c0_9 = arith.constant 0 : index
    %5 = vector.load %arg5[%c0_8, %c0_9] : memref<1x32xf32, #tpu.memory_space<vmem>>, vector<1x32xf32>
    %6 = vector.broadcast %5 : vector<1x32xf32> to vector<2x32xf32>
    %7 = arith.addf %4, %6 : vector<2x32xf32>
    %8 = vector.shape_cast %7 : vector<2x32xf32> to vector<2x1x32xf32>
    %9 = vector.broadcast %8 : vector<2x1x32xf32> to vector<2x8x32xf32>
    %10 = arith.mulf %1, %9 : vector<2x8x32xf32>
    %cst_10 = arith.constant dense<0.000000e+00> : vector<2x8xf32>
    %11 = vector.multi_reduction <add>, %10, %cst_10 [2] : vector<2x8x32xf32> to vector<2x8xf32>
    %cst_11 = arith.constant dense<0xFF800000> : vector<2xf32>
    %12 = vector.multi_reduction <maximumf>, %11, %cst_11 [1] : vector<2x8xf32> to vector<2xf32>
    %13 = vector.shape_cast %12 : vector<2xf32> to vector<2x1xf32>
    %14 = vector.broadcast %13 : vector<2x1xf32> to vector<2x8xf32>
    %15 = arith.subf %11, %14 : vector<2x8xf32>
    %16 = math.exp %15 : vector<2x8xf32>
    %cst_12 = arith.constant dense<0.000000e+00> : vector<2xf32>
    %17 = vector.multi_reduction <add>, %16, %cst_12 [1] : vector<2x8xf32> to vector<2xf32>
    %18 = vector.shape_cast %17 : vector<2xf32> to vector<2x1xf32>
    %19 = tpu.reciprocal %18 : vector<2x1xf32> -> vector<2x1xf32>
    %20 = vector.broadcast %19 : vector<2x1xf32> to vector<2x8xf32>
    %21 = arith.mulf %16, %20 : vector<2x8xf32>
    %22 = vector.shape_cast %21 : vector<2x8xf32> to vector<2x8x1xf32>
    %23 = vector.broadcast %22 : vector<2x8x1xf32> to vector<2x8x32xf32>
    %24 = arith.mulf %23, %1 : vector<2x8x32xf32>
    %cst_13 = arith.constant dense<0.000000e+00> : vector<2x32xf32>
    %25 = vector.multi_reduction <add>, %24, %cst_13 [1] : vector<2x8x32xf32> to vector<2x32xf32>
    %26 = arith.addf %25, %0 : vector<2x32xf32>
    %c0_14 = arith.constant 0 : index
    %c0_15 = arith.constant 0 : index
    %27 = vector.load %arg13[%c0_14, %c0_15] : memref<2x8xf32, #tpu.memory_space<vmem>>, vector<2x8xf32>
    tpu.vector_store %arg13[%c0_14, %c0_15], %21 {strides = array<i32>} : memref<2x8xf32, #tpu.memory_space<vmem>>, vector<2x8xf32>,
    %c0_16 = arith.constant 0 : index
    %c0_17 = arith.constant 0 : index
    %28 = vector.load %arg6[%c0_16, %c0_17] : memref<32x160xf32, #tpu.memory_space<vmem>>, vector<32x160xf32>
    %cst_18 = arith.constant dense<0.000000e+00> : vector<2x160xf32>
    %29 = tpu.matmul %0, %28, %cst_18 {dimension_numbers = #tpu.dot_dimension_numbers<[1], [0], [0], [1], [0, 0, 1, 1], [], []>} : vector<2x32xf32>, vector<32x160xf32>, vector<2x160xf32> -> vector<2x160xf32>
    %c0_19 = arith.constant 0 : index
    %c0_20 = arith.constant 0 : index
    %30 = vector.load %arg7[%c0_19, %c0_20] : memref<1x160xf32, #tpu.memory_space<vmem>>, vector<1x160xf32>
    %31 = vector.broadcast %30 : vector<1x160xf32> to vector<2x160xf32>
    %32 = arith.addf %29, %31 : vector<2x160xf32>
    %c0_21 = arith.constant 0 : index
    %c0_22 = arith.constant 0 : index
    %33 = vector.load %arg8[%c0_21, %c0_22] : memref<32x96xf32, #tpu.memory_space<vmem>>, vector<32x96xf32>
    %cst_23 = arith.constant dense<0.000000e+00> : vector<2x96xf32>
    %34 = tpu.matmul %26, %33, %cst_23 {dimension_numbers = #tpu.dot_dimension_numbers<[1], [0], [0], [1], [0, 0, 1, 1], [], []>} : vector<2x32xf32>, vector<32x96xf32>, vector<2x96xf32> -> vector<2x96xf32>
    %35 = vector.extract_strided_slice %32 {offsets = [0, 0], sizes = [2, 96], strides = [1, 1]} : vector<2x160xf32> to vector<2x96xf32>
    %36 = arith.addf %34, %35 : vector<2x96xf32>
    %cst_24 = arith.constant 0.000000e+00 : f32
    %37 = vector.broadcast %cst_24 : f32 to vector<2x96xf32>
    %38 = arith.cmpf ogt, %36, %37 : vector<2x96xf32>
    %39 = math.exp %36 : vector<2x96xf32>
    %cst_25 = arith.constant 1.000000e+00 : f32
    %40 = vector.broadcast %cst_25 : f32 to vector<2x96xf32>
    %41 = arith.subf %39, %40 : vector<2x96xf32>
    %cst_26 = arith.constant 1.67326319 : f32
    %42 = vector.broadcast %cst_26 : f32 to vector<2x96xf32>
    %43 = arith.mulf %42, %41 : vector<2x96xf32>
    %44 = arith.select %38, %36, %43 : vector<2x96xi1>, vector<2x96xf32>
    %cst_27 = arith.constant 1.05070102 : f32
    %45 = vector.broadcast %cst_27 : f32 to vector<2x96xf32>
    %46 = arith.mulf %45, %44 : vector<2x96xf32>
    %47 = vector.extract_strided_slice %46 {offsets = [0, 0], sizes = [2, 32], strides = [1, 1]} : vector<2x96xf32> to vector<2x32xf32>
    %48 = vector.extract_strided_slice %46 {offsets = [0, 32], sizes = [2, 32], strides = [1, 1]} : vector<2x96xf32> to vector<2x32xf32>
    %49 = vector.extract_strided_slice %46 {offsets = [0, 64], sizes = [2, 32], strides = [1, 1]} : vector<2x96xf32> to vector<2x32xf32>
    %c0_28 = arith.constant 0 : index
    %c0_29 = arith.constant 0 : index
    %c0_30 = arith.constant 0 : index
    %50 = vector.load %arg10[%c0_28, %c0_29, %c0_30] : memref<4x32x32xf32, #tpu.memory_space<vmem>>, vector<1x32x32xf32>
    %51 = vector.shape_cast %50 : vector<1x32x32xf32> to vector<32x32xf32>
    %cst_31 = arith.constant dense<0.000000e+00> : vector<2x32xf32>
    %52 = tpu.matmul %47, %51, %cst_31 {dimension_numbers = #tpu.dot_dimension_numbers<[1], [0], [0], [1], [0, 0, 1, 1], [], []>} : vector<2x32xf32>, vector<32x32xf32>, vector<2x32xf32> -> vector<2x32xf32>
    %c0_32 = arith.constant 0 : index
    %c0_33 = arith.constant 0 : index
    %c0_34 = arith.constant 0 : index
    %53 = vector.load %arg11[%c0_32, %c0_33, %c0_34] : memref<4x1x32xf32, #tpu.memory_space<vmem>>, vector<1x1x32xf32>
    %54 = vector.shape_cast %53 : vector<1x1x32xf32> to vector<1x32xf32>
    %55 = vector.broadcast %54 : vector<1x32xf32> to vector<2x32xf32>
    %56 = arith.addf %52, %55 : vector<2x32xf32>
    %cst_35 = arith.constant 0.000000e+00 : f32
    %57 = vector.broadcast %cst_35 : f32 to vector<2x32xf32>
    %58 = arith.subf %57, %56 : vector<2x32xf32>
    %59 = math.exp %58 : vector<2x32xf32>
    %cst_36 = arith.constant 1.000000e+00 : f32
    %60 = vector.broadcast %cst_36 : f32 to vector<2x32xf32>
    %61 = arith.addf %60, %59 : vector<2x32xf32>
    %cst_37 = arith.constant 1.000000e+00 : f32
    %62 = vector.broadcast %cst_37 : f32 to vector<2x32xf32>
    %63 = arith.divf %62, %61 : vector<2x32xf32>
    %c1 = arith.constant 1 : index
    %c0_38 = arith.constant 0 : index
    %c0_39 = arith.constant 0 : index
    %64 = vector.load %arg10[%c1, %c0_38, %c0_39] : memref<4x32x32xf32, #tpu.memory_space<vmem>>, vector<1x32x32xf32>
    %65 = vector.shape_cast %64 : vector<1x32x32xf32> to vector<32x32xf32>
    %cst_40 = arith.constant dense<0.000000e+00> : vector<2x32xf32>
    %66 = tpu.matmul %48, %65, %cst_40 {dimension_numbers = #tpu.dot_dimension_numbers<[1], [0], [0], [1], [0, 0, 1, 1], [], []>} : vector<2x32xf32>, vector<32x32xf32>, vector<2x32xf32> -> vector<2x32xf32>
    %c1_41 = arith.constant 1 : index
    %c0_42 = arith.constant 0 : index
    %c0_43 = arith.constant 0 : index
    %67 = vector.load %arg11[%c1_41, %c0_42, %c0_43] : memref<4x1x32xf32, #tpu.memory_space<vmem>>, vector<1x1x32xf32>
    %68 = vector.shape_cast %67 : vector<1x1x32xf32> to vector<1x32xf32>
    %69 = vector.broadcast %68 : vector<1x32xf32> to vector<2x32xf32>
    %70 = arith.addf %66, %69 : vector<2x32xf32>
    %cst_44 = arith.constant 0.000000e+00 : f32
    %71 = vector.broadcast %cst_44 : f32 to vector<2x32xf32>
    %72 = arith.subf %71, %70 : vector<2x32xf32>
    %73 = math.exp %72 : vector<2x32xf32>
    %cst_45 = arith.constant 1.000000e+00 : f32
    %74 = vector.broadcast %cst_45 : f32 to vector<2x32xf32>
    %75 = arith.addf %74, %73 : vector<2x32xf32>
    %cst_46 = arith.constant 1.000000e+00 : f32
    %76 = vector.broadcast %cst_46 : f32 to vector<2x32xf32>
    %77 = arith.divf %76, %75 : vector<2x32xf32>
    %78 = arith.mulf %77, %2 : vector<2x32xf32>
    %79 = arith.mulf %63, %49 : vector<2x32xf32>
    %80 = arith.addf %78, %79 : vector<2x32xf32>
    %c0_47 = arith.constant 0 : index
    %c0_48 = arith.constant 0 : index
    %81 = vector.load %arg14[%c0_47, %c0_48] : memref<2x32xf32, #tpu.memory_space<vmem>>, vector<2x32xf32>
    tpu.vector_store %arg14[%c0_47, %c0_48], %80 {strides = array<i32>} : memref<2x32xf32, #tpu.memory_space<vmem>>, vector<2x32xf32>,
    %c0_49 = arith.constant 0 : index
    %c0_50 = arith.constant 0 : index
    %c0_51 = arith.constant 0 : index
    %82 = vector.load %arg9[%c0_49, %c0_50, %c0_51] : memref<2x32x32xf32, #tpu.memory_space<vmem>>, vector<1x32x32xf32>
    %83 = vector.shape_cast %82 : vector<1x32x32xf32> to vector<32x32xf32>
    %cst_52 = arith.constant dense<0.000000e+00> : vector<2x32xf32>
    %84 = tpu.matmul %80, %83, %cst_52 {dimension_numbers = #tpu.dot_dimension_numbers<[1], [0], [0], [1], [0, 0, 1, 1], [], []>} : vector<2x32xf32>, vector<32x32xf32>, vector<2x32xf32> -> vector<2x32xf32>
    %85 = vector.extract_strided_slice %32 {offsets = [0, 96], sizes = [2, 32], strides = [1, 1]} : vector<2x160xf32> to vector<2x32xf32>
    %86 = arith.addf %84, %85 : vector<2x32xf32>
    %cst_53 = arith.constant 0.000000e+00 : f32
    %87 = vector.broadcast %cst_53 : f32 to vector<2x32xf32>
    %88 = arith.cmpf ogt, %86, %87 : vector<2x32xf32>
    %89 = math.exp %86 : vector<2x32xf32>
    %cst_54 = arith.constant 1.000000e+00 : f32
    %90 = vector.broadcast %cst_54 : f32 to vector<2x32xf32>
    %91 = arith.subf %89, %90 : vector<2x32xf32>
    %cst_55 = arith.constant 1.67326319 : f32
    %92 = vector.broadcast %cst_55 : f32 to vector<2x32xf32>
    %93 = arith.mulf %92, %91 : vector<2x32xf32>
    %94 = arith.select %88, %86, %93 : vector<2x32xi1>, vector<2x32xf32>
    %cst_56 = arith.constant 1.05070102 : f32
    %95 = vector.broadcast %cst_56 : f32 to vector<2x32xf32>
    %96 = arith.mulf %95, %94 : vector<2x32xf32>
    %c2 = arith.constant 2 : index
    %c0_57 = arith.constant 0 : index
    %c0_58 = arith.constant 0 : index
    %97 = vector.load %arg10[%c2, %c0_57, %c0_58] : memref<4x32x32xf32, #tpu.memory_space<vmem>>, vector<1x32x32xf32>
    %98 = vector.shape_cast %97 : vector<1x32x32xf32> to vector<32x32xf32>
    %cst_59 = arith.constant dense<0.000000e+00> : vector<2x32xf32>
    %99 = tpu.matmul %96, %98, %cst_59 {dimension_numbers = #tpu.dot_dimension_numbers<[1], [0], [0], [1], [0, 0, 1, 1], [], []>} : vector<2x32xf32>, vector<32x32xf32>, vector<2x32xf32> -> vector<2x32xf32>
    %c2_60 = arith.constant 2 : index
    %c0_61 = arith.constant 0 : index
    %c0_62 = arith.constant 0 : index
    %100 = vector.load %arg11[%c2_60, %c0_61, %c0_62] : memref<4x1x32xf32, #tpu.memory_space<vmem>>, vector<1x1x32xf32>
    %101 = vector.shape_cast %100 : vector<1x1x32xf32> to vector<1x32xf32>
    %102 = vector.broadcast %101 : vector<1x32xf32> to vector<2x32xf32>
    %103 = arith.addf %99, %102 : vector<2x32xf32>
    %cst_63 = arith.constant 0.000000e+00 : f32
    %104 = vector.broadcast %cst_63 : f32 to vector<2x32xf32>
    %105 = arith.subf %104, %103 : vector<2x32xf32>
    %106 = math.exp %105 : vector<2x32xf32>
    %cst_64 = arith.constant 1.000000e+00 : f32
    %107 = vector.broadcast %cst_64 : f32 to vector<2x32xf32>
    %108 = arith.addf %107, %106 : vector<2x32xf32>
    %cst_65 = arith.constant 1.000000e+00 : f32
    %109 = vector.broadcast %cst_65 : f32 to vector<2x32xf32>
    %110 = arith.divf %109, %108 : vector<2x32xf32>
    %111 = arith.mulf %110, %26 : vector<2x32xf32>
    %c1_66 = arith.constant 1 : index
    %c0_67 = arith.constant 0 : index
    %c0_68 = arith.constant 0 : index
    %112 = vector.load %arg9[%c1_66, %c0_67, %c0_68] : memref<2x32x32xf32, #tpu.memory_space<vmem>>, vector<1x32x32xf32>
    %113 = vector.shape_cast %112 : vector<1x32x32xf32> to vector<32x32xf32>
    %cst_69 = arith.constant dense<0.000000e+00> : vector<2x32xf32>
    %114 = tpu.matmul %111, %113, %cst_69 {dimension_numbers = #tpu.dot_dimension_numbers<[1], [0], [0], [1], [0, 0, 1, 1], [], []>} : vector<2x32xf32>, vector<32x32xf32>, vector<2x32xf32> -> vector<2x32xf32>
    %115 = vector.extract_strided_slice %32 {offsets = [0, 128], sizes = [2, 32], strides = [1, 1]} : vector<2x160xf32> to vector<2x32xf32>
    %116 = arith.addf %114, %115 : vector<2x32xf32>
    %cst_70 = arith.constant 0.000000e+00 : f32
    %117 = vector.broadcast %cst_70 : f32 to vector<2x32xf32>
    %118 = arith.cmpf ogt, %116, %117 : vector<2x32xf32>
    %119 = math.exp %116 : vector<2x32xf32>
    %cst_71 = arith.constant 1.000000e+00 : f32
    %120 = vector.broadcast %cst_71 : f32 to vector<2x32xf32>
    %121 = arith.subf %119, %120 : vector<2x32xf32>
    %cst_72 = arith.constant 1.67326319 : f32
    %122 = vector.broadcast %cst_72 : f32 to vector<2x32xf32>
    %123 = arith.mulf %122, %121 : vector<2x32xf32>
    %124 = arith.select %118, %116, %123 : vector<2x32xi1>, vector<2x32xf32>
    %cst_73 = arith.constant 1.05070102 : f32
    %125 = vector.broadcast %cst_73 : f32 to vector<2x32xf32>
    %126 = arith.mulf %125, %124 : vector<2x32xf32>
    %c3 = arith.constant 3 : index
    %c0_74 = arith.constant 0 : index
    %c0_75 = arith.constant 0 : index
    %127 = vector.load %arg10[%c3, %c0_74, %c0_75] : memref<4x32x32xf32, #tpu.memory_space<vmem>>, vector<1x32x32xf32>
    %128 = vector.shape_cast %127 : vector<1x32x32xf32> to vector<32x32xf32>
    %cst_76 = arith.constant dense<0.000000e+00> : vector<2x32xf32>
    %129 = tpu.matmul %126, %128, %cst_76 {dimension_numbers = #tpu.dot_dimension_numbers<[1], [0], [0], [1], [0, 0, 1, 1], [], []>} : vector<2x32xf32>, vector<32x32xf32>, vector<2x32xf32> -> vector<2x32xf32>
    %c3_77 = arith.constant 3 : index
    %c0_78 = arith.constant 0 : index
    %c0_79 = arith.constant 0 : index
    %130 = vector.load %arg11[%c3_77, %c0_78, %c0_79] : memref<4x1x32xf32, #tpu.memory_space<vmem>>, vector<1x1x32xf32>
    %131 = vector.shape_cast %130 : vector<1x1x32xf32> to vector<1x32xf32>
    %132 = vector.broadcast %131 : vector<1x32xf32> to vector<2x32xf32>
    %133 = arith.addf %129, %132 : vector<2x32xf32>
    %cst_80 = arith.constant 0.000000e+00 : f32
    %134 = vector.broadcast %cst_80 : f32 to vector<2x32xf32>
    %135 = arith.cmpf ogt, %133, %134 : vector<2x32xf32>
    %136 = math.exp %133 : vector<2x32xf32>
    %cst_81 = arith.constant 1.000000e+00 : f32
    %137 = vector.broadcast %cst_81 : f32 to vector<2x32xf32>
    %138 = arith.subf %136, %137 : vector<2x32xf32>
    %cst_82 = arith.constant 1.67326319 : f32
    %139 = vector.broadcast %cst_82 : f32 to vector<2x32xf32>
    %140 = arith.mulf %139, %138 : vector<2x32xf32>
    %141 = arith.select %135, %133, %140 : vector<2x32xi1>, vector<2x32xf32>
    %cst_83 = arith.constant 1.05070102 : f32
    %142 = vector.broadcast %cst_83 : f32 to vector<2x32xf32>
    %143 = arith.mulf %142, %141 : vector<2x32xf32>
    %c0_84 = arith.constant 0 : index
    %c0_85 = arith.constant 0 : index
    %144 = vector.load %arg12[%c0_84, %c0_85] : memref<2x32xf32, #tpu.memory_space<vmem>>, vector<2x32xf32>
    tpu.vector_store %arg12[%c0_84, %c0_85], %143 {strides = array<i32>} : memref<2x32xf32, #tpu.memory_space<vmem>>, vector<2x32xf32>,
    return
  }
  func.func @transform_0(%arg0: i32) -> (i32, i32) {
    %c0_i32 = arith.constant 0 : i32
    %c0_i32_0 = arith.constant 0 : i32
    return %arg0, %c0_i32 : i32, i32
  }
  func.func @transform_1(%arg0: i32) -> (i32, i32, i32) {
    %c0_i32 = arith.constant 0 : i32
    %c0_i32_0 = arith.constant 0 : i32
    %c0_i32_1 = arith.constant 0 : i32
    return %arg0, %c0_i32, %c0_i32_0 : i32, i32, i32
  }
  func.func @transform_2(%arg0: i32) -> (i32, i32) {
    %c0_i32 = arith.constant 0 : i32
    %c0_i32_0 = arith.constant 0 : i32
    return %arg0, %c0_i32 : i32, i32
  }
  func.func @transform_3(%arg0: i32) -> (i32, i32) {
    %c0_i32 = arith.constant 0 : i32
    %c0_i32_0 = arith.constant 0 : i32
    %c0_i32_1 = arith.constant 0 : i32
    return %c0_i32, %c0_i32_0 : i32, i32
  }
  func.func @transform_4(%arg0: i32) -> (i32, i32) {
    %c0_i32 = arith.constant 0 : i32
    %c0_i32_0 = arith.constant 0 : i32
    %c0_i32_1 = arith.constant 0 : i32
    return %c0_i32, %c0_i32_0 : i32, i32
  }
  func.func @transform_5(%arg0: i32) -> (i32, i32) {
    %c0_i32 = arith.constant 0 : i32
    %c0_i32_0 = arith.constant 0 : i32
    %c0_i32_1 = arith.constant 0 : i32
    return %c0_i32, %c0_i32_0 : i32, i32
  }
  func.func @transform_6(%arg0: i32) -> (i32, i32) {
    %c0_i32 = arith.constant 0 : i32
    %c0_i32_0 = arith.constant 0 : i32
    %c0_i32_1 = arith.constant 0 : i32
    return %c0_i32, %c0_i32_0 : i32, i32
  }
  func.func @transform_7(%arg0: i32) -> (i32, i32) {
    %c0_i32 = arith.constant 0 : i32
    %c0_i32_0 = arith.constant 0 : i32
    %c0_i32_1 = arith.constant 0 : i32
    return %c0_i32, %c0_i32_0 : i32, i32
  }
  func.func @transform_8(%arg0: i32) -> (i32, i32, i32) {
    %c0_i32 = arith.constant 0 : i32
    %c0_i32_0 = arith.constant 0 : i32
    %c0_i32_1 = arith.constant 0 : i32
    %c0_i32_2 = arith.constant 0 : i32
    return %c0_i32, %c0_i32_0, %c0_i32_1 : i32, i32, i32
  }
  func.func @transform_9(%arg0: i32) -> (i32, i32, i32) {
    %c0_i32 = arith.constant 0 : i32
    %c0_i32_0 = arith.constant 0 : i32
    %c0_i32_1 = arith.constant 0 : i32
    %c0_i32_2 = arith.constant 0 : i32
    return %c0_i32, %c0_i32_0, %c0_i32_1 : i32, i32, i32
  }
  func.func @transform_10(%arg0: i32) -> (i32, i32, i32) {
    %c0_i32 = arith.constant 0 : i32
    %c0_i32_0 = arith.constant 0 : i32
    %c0_i32_1 = arith.constant 0 : i32
    %c0_i32_2 = arith.constant 0 : i32
    return %c0_i32, %c0_i32_0, %c0_i32_1 : i32, i32, i32
  }
  func.func @transform_11(%arg0: i32) -> (i32, i32) {
    %c0_i32 = arith.constant 0 : i32
    %c0_i32_0 = arith.constant 0 : i32
    return %arg0, %c0_i32 : i32, i32
  }
  func.func @transform_12(%arg0: i32) -> (i32, i32) {
    %c0_i32 = arith.constant 0 : i32
    %c0_i32_0 = arith.constant 0 : i32
    return %arg0, %c0_i32 : i32, i32
  }
  func.func @transform_13(%arg0: i32) -> (i32, i32) {
    %c0_i32 = arith.constant 0 : i32
    %c0_i32_0 = arith.constant 0 : i32
    return %arg0, %c0_i32 : i32, i32
  }
}

</mosaic_0001>

<bundles_post_ra>
// kernel: tpu_custom_call.1
= control target key start
LH: loop header
LB: loop body
LE: loop exit
PB: predicated region body
PF: predicated region fallthrough
CT: control target
= control target key end

     0   :  { %19 = vsyncpa [#allocation3], 0  ;;  %s1996_s0 = inlined_call_operand.hbm [shape: f32[2,32], index: 0, kind: input, shape index: {}]   ;;  %s1997_s1 = inlined_call_operand.hbm [shape: f32[2,8,32], index: 1, kind: input, shape index: {}]   ;;  %s1998_s2 = inlined_call_operand.vmem [shape: f32[2,32], index: 2, kind: input, shape index: {}]   ;;  %s1999_s3 = inlined_call_operand.hbm [shape: f32[32,32], index: 3, kind: input, shape index: {}]   ;;  %s2000_s4 = inlined_call_operand.vmem [shape: f32[1,32], index: 4, kind: input, shape index: {}]   ;;  %s2001_s5 = inlined_call_operand.hbm [shape: f32[32,160], index: 5, kind: input, shape index: {}]   ;;  %s2002_s6 = inlined_call_operand.vmem [shape: f32[1,160], index: 6, kind: input, shape index: {}]   ;;  %s2003_s7 = inlined_call_operand.hbm [shape: f32[32,96], index: 7, kind: input, shape index: {}]   ;;  %s2004_s8 = inlined_call_operand.hbm [shape: f32[2,32,32], index: 8, kind: input, shape index: {}]   ;;  %s2005_s9 = inlined_call_operand.hbm [shape: f32[4,32,32], index: 9, kind: input, shape index: {}]   ;;  %s2006_s10 = inlined_call_operand.vmem [shape: f32[4,1,32], index: 10, kind: input, shape index: {}]   ;;  %s2007_s11 = inlined_call_operand.hbm [shape: f32[2,32], index: 11, kind: output, shape index: {0}]   ;;  %s2008_s12 = inlined_call_operand.hbm [shape: f32[2,8], index: 12, kind: output, shape index: {1}]   ;;  %s2009_s13 = inlined_call_operand.hbm [shape: f32[2,32], index: 13, kind: output, shape index: {2}]  }
   0x1   :  { %20 = vsyncpa [#allocation6], 0 }
   0x2   :  { %21 = vsyncpa [#allocation9], 0 }
   0x3   :  { %22 = vsyncpa [#allocation12], 0 }
   0x4   :  { %23 = vsyncpa [#allocation4], 0 }
   0x5   :  { %24 = vsyncpa [#allocation16], 0  ;;  %s1641_s25 = smov [#allocation5]   ;;  %s1409_s29 = scalar_lea.hbm %s1997_s1, 256 }
   0x6   :  { %s40_s26 = sshll.u32 %s1641_s25, 4  ;;  %p1410_p0 = scmp.ne.s32.totalorder %s1997_s1, %s1409_s29  ;;  %s41_s26 = int_to_ptr.vmem [resolvable:$true] %s40_s26 }
   0x7   :  { %p1413_p1 = scmp.lt.u32.totalorder %s1409_s29, %s1997_s1 }
   0x9   :  { %p1415_p2 = pnand %p1413_p1, %p1410_p0 }
   0xb   :  { %1418 = shalt.err (!%p1415_p2)
}
   0xc   :  { %s1419_s17 = scalar_lea.vmem %s41_s26, 256  ;;  %p1424_p4 = scmp.lt.s32.totalorder %s41_s26, %s41_s26 }
   0xd   :  { %p1420_p3 = scmp.ne.s32.totalorder %s41_s26, %s1419_s17  ;;  %p1425_p5 = scmp.lt.s32.totalorder %s1419_s17, %s1419_s17 }
   0xf   :  { %p1426_p6 = por %p1425_p5, %p1424_p4 }
  0x11   :  { %p1427_p7 = pnand %p1426_p6, %p1420_p3 }
  0x13   :  { %1430 = shalt.err (!%p1427_p7)
}
  0x14   :  { %s1642_s18 = smov 128   ;;  %s1643_s19 = smov 8  }
  0x15   :  { %46 = dma.hbm_to_vmem [thread:$0]  %s1997_s1, 256, %s41_s26, [#allocation6], %s1642_s18, %s1642_s18, %s1643_s19  }
  0x16   :  { %s1644_s22 = smov [#allocation8]   ;;  %s1431_s27 = scalar_lea.hbm %s2001_s5, 1024 }
  0x17   :  { %s68_s23 = sshll.u32 %s1644_s22, 4  ;;  %p1432_p8 = scmp.ne.s32.totalorder %s2001_s5, %s1431_s27  ;;  %s69_s23 = int_to_ptr.vmem [resolvable:$true] %s68_s23 }
  0x18   :  { %p1435_p9 = scmp.lt.u32.totalorder %s1431_s27, %s2001_s5 }
  0x1a   :  { %p1437_p10 = pnand %p1435_p9, %p1432_p8 }
  0x1c   :  { %1440 = shalt.err (!%p1437_p10)
}
  0x1d   :  { %s1441_s15 = scalar_lea.vmem %s69_s23, 1024  ;;  %p1446_p12 = scmp.lt.s32.totalorder %s69_s23, %s69_s23 }
  0x1e   :  { %p1442_p11 = scmp.ne.s32.totalorder %s69_s23, %s1441_s15  ;;  %p1447_p13 = scmp.lt.s32.totalorder %s1441_s15, %s1441_s15 }
  0x20   :  { %p1448_p0 = por %p1447_p13, %p1446_p12 }
  0x22   :  { %p1449_p1 = pnand %p1448_p0, %p1442_p11 }
  0x24   :  { %1452 = shalt.err (!%p1449_p1)
}
  0x25   :  { %s1645_s1 = smov 256   ;;  %s1646_s26 = smov 16  }
  0x26   :  { %74 = dma.hbm_to_vmem [thread:$0]  %s2001_s5, 1024, %s69_s23, [#allocation9], %s1645_s1, %s1645_s1, %s1646_s26  }
  0x27   :  { %s1647_s20 = smov [#allocation11]   ;;  %s1648_s22 = smov [#allocation2]  }
  0x28   :  { %s94_s21 = sshll.u32 %s1647_s20, 4  ;;  %s31_s24 = sshll.u32 %s1648_s22, 4  ;;  %s95_s21 = int_to_ptr.vmem [resolvable:$true] %s94_s21  ;;  %s32_s24 = int_to_ptr.vmem [resolvable:$true] %s31_s24 }
  0x29   :  { %s1453_s28 = scalar_lea.hbm %s2004_s8, 1024 }
  0x2a   :  { %p1454_p2 = scmp.ne.s32.totalorder %s2004_s8, %s1453_s28  ;;  %p1457_p3 = scmp.lt.u32.totalorder %s1453_s28, %s2004_s8 }
  0x2c   :  { %p1459_p4 = pnand %p1457_p3, %p1454_p2 }
  0x2e   :  { %1462 = shalt.err (!%p1459_p4)
}
  0x2f   :  { %s1463_s5 = scalar_lea.vmem %s95_s21, 1024  ;;  %p1468_p6 = scmp.lt.s32.totalorder %s95_s21, %s95_s21 }
  0x30   :  { %p1464_p5 = scmp.ne.s32.totalorder %s95_s21, %s1463_s5  ;;  %p1469_p7 = scmp.lt.s32.totalorder %s1463_s5, %s1463_s5 }
  0x32   :  { %p1470_p8 = por %p1469_p7, %p1468_p6 }
  0x34   :  { %p1471_p9 = pnand %p1470_p8, %p1464_p5 }
  0x36   :  { %1474 = shalt.err (!%p1471_p9)
}
  0x37   :  { %100 = dma.hbm_to_vmem [thread:$0]  %s2004_s8, 1024, %s95_s21, [#allocation12], %s1642_s18, %s1642_s18, %s1643_s19  }
  0x38   :  { %s1475_s17 = scalar_lea.hbm %s1996_s0, 32 }
  0x39   :  { %p1476_p10 = scmp.ne.s32.totalorder %s1996_s0, %s1475_s17  ;;  %p1479_p11 = scmp.lt.u32.totalorder %s1475_s17, %s1996_s0 }
  0x3b   :  { %p1481_p12 = pnand %p1479_p11, %p1476_p10 }
  0x3d   :  { %1484 = shalt.err (!%p1481_p12)
}
  0x3e   :  { %s1485_s28 = scalar_lea.vmem %s32_s24, 32  ;;  %p1490_p0 = scmp.lt.s32.totalorder %s32_s24, %s32_s24 }
  0x3f   :  { %p1486_p13 = scmp.ne.s32.totalorder %s32_s24, %s1485_s28  ;;  %p1491_p1 = scmp.lt.s32.totalorder %s1485_s28, %s1485_s28 }
  0x41   :  { %p1492_p2 = por %p1491_p1, %p1490_p0 }
  0x43   :  { %p1493_p3 = pnand %p1492_p2, %p1486_p13 }
  0x45   :  { %1496 = shalt.err (!%p1493_p3)
}
  0x46   :  { %34 = dma.hbm_to_vmem [thread:$0]  %s1996_s0, 32, %s32_s24, [#allocation3]  }
  0x47   :  { %s1649_s29 = smov [#allocation7]   ;;  %s1650_s14 = smov [#allocation10]  }
  0x48   :  { %s54_s30 = sshll.u32 %s1649_s29, 4  ;;  %s82_s15 = sshll.u32 %s1650_s14, 4  ;;  %s55_s30 = int_to_ptr.vmem [resolvable:$true] %s54_s30  ;;  %s1787_s15 = int_to_ptr.vmem [resolvable:$true] %s82_s15 }
  0x49   :  { %s1497_s1 = scalar_lea.hbm %s1999_s3, 512 }
  0x4a   :  { %p1498_p4 = scmp.ne.s32.totalorder %s1999_s3, %s1497_s1  ;;  %p1501_p5 = scmp.lt.u32.totalorder %s1497_s1, %s1999_s3 }
  0x4c   :  { %p1503_p6 = pnand %p1501_p5, %p1498_p4 }
  0x4e   :  { %1506 = shalt.err (!%p1503_p6)
}
  0x4f   :  { %s1507_s0 = scalar_lea.vmem %s55_s30, 512  ;;  %p1512_p8 = scmp.lt.s32.totalorder %s55_s30, %s55_s30 }
  0x50   :  { %p1508_p7 = scmp.ne.s32.totalorder %s55_s30, %s1507_s0  ;;  %p1513_p9 = scmp.lt.s32.totalorder %s1507_s0, %s1507_s0 }
  0x52   :  { %p1514_p10 = por %p1513_p9, %p1512_p8 }
  0x54   :  { %p1515_p11 = pnand %p1514_p10, %p1508_p7 }
  0x56   :  { %1518 = shalt.err (!%p1515_p11)
}
  0x57   :  { %60 = dma.hbm_to_vmem [thread:$0]  %s1999_s3, 512, %s55_s30, [#allocation6], %s1642_s18, %s1642_s18, %s1643_s19  }
  0x58   :  { %s1519_s28 = scalar_lea.hbm %s2003_s7, 512 }
  0x59   :  { %p1520_p12 = scmp.ne.s32.totalorder %s2003_s7, %s1519_s28  ;;  %p1523_p13 = scmp.lt.u32.totalorder %s1519_s28, %s2003_s7 }
  0x5b   :  { %p1525_p0 = pnand %p1523_p13, %p1520_p12 }
  0x5d   :  { %1528 = shalt.err (!%p1525_p0)
}
  0x5e   :  { %s1529_s5 = scalar_lea.vmem %s1787_s15, 512  ;;  %p1534_p2 = scmp.lt.s32.totalorder %s1787_s15, %s1787_s15 }
  0x5f   :  { %p1530_p1 = scmp.ne.s32.totalorder %s1787_s15, %s1529_s5  ;;  %p1535_p3 = scmp.lt.s32.totalorder %s1529_s5, %s1529_s5 }
  0x61   :  { %p1536_p4 = por %p1535_p3, %p1534_p2 }
  0x63   :  { %p1537_p5 = pnand %p1536_p4, %p1530_p1 }
  0x65   :  { %1540 = shalt.err (!%p1537_p5)
}
  0x66   :  { %88 = dma.hbm_to_vmem [thread:$0]  %s2003_s7, 512, %s1787_s15, [#allocation9], %s1642_s18, %s1642_s18, %s1643_s19  }
  0x67   :  { %s1651_s23 = smov [#allocation13]   ;;  %s1541_s17 = scalar_lea.hbm %s2005_s9, 2048 }
  0x68   :  { %s106_s1 = sshll.u32 %s1651_s23, 4  ;;  %p1542_p6 = scmp.ne.s32.totalorder %s2005_s9, %s1541_s17  ;;  %s107_s1 = int_to_ptr.vmem [resolvable:$true] %s106_s1 }
  0x69   :  { %p1545_p7 = scmp.lt.u32.totalorder %s1541_s17, %s2005_s9 }
  0x6b   :  { %p1547_p8 = pnand %p1545_p7, %p1542_p6 }
  0x6d   :  { %1550 = shalt.err (!%p1547_p8)
}
  0x6e   :  { %s1551_s25 = scalar_lea.vmem %s107_s1, 2048  ;;  %p1556_p10 = scmp.lt.s32.totalorder %s107_s1, %s107_s1 }
  0x6f   :  { %p1552_p9 = scmp.ne.s32.totalorder %s107_s1, %s1551_s25  ;;  %p1557_p11 = scmp.lt.s32.totalorder %s1551_s25, %s1551_s25 }
  0x71   :  { %p1558_p12 = por %p1557_p11, %p1556_p10 }
  0x73   :  { %p1559_p13 = pnand %p1558_p12, %p1552_p9 }
  0x75   :  { %1562 = shalt.err (!%p1559_p13)
}
  0x76   :  { %112 = dma.hbm_to_vmem [thread:$0]  %s2005_s9, 2048, %s107_s1, [#allocation12], %s1642_s18, %s1642_s18, %s1643_s19  }
  0x77   :  { %1629 = dma.done.wait [#allocation3], 32  }
  0x78   :  { %1630 = vsyncadd [#allocation3], 4294967264 }
  0x79   :  { %1631 = dma.done.wait [#allocation6], 768  }
  0x7a   :  { %1632 = vsyncadd [#allocation6], 4294966528 }
  0x7b   :  { %1633 = dma.done.wait [#allocation9], 1536  }
  0x7c   :  { %1634 = vsyncadd [#allocation9], 4294965760 }
  0x7d   :  { %1635 = dma.done.wait [#allocation12], 3072  }
  0x7e   :  { %1636 = vsyncadd [#allocation12], 4294964224  ;;  %v1652_v0 = vmov 0.0|0.0   ;;  %vm1653_vm0 = vmmov 0   ;;  %v1654_v1 = vmov 0.0   ;;  %v140_v2 = vld [vmem:[#allocation7] sm:$0xff]  ;;  %v229_v11 = vlaneseq }
  0x7f   :  { %1303 = vmatprep.subr.bf16.mxu0 %v1652_v0  ;;  %1223 = vmatprep.mubr.msk.f32.mxu0 %vm1653_vm0, %v1654_v1  ;;  %v141_v3 = vld [vmem:[#allocation7 + $0x8] sm:$0xff]  ;;  %v142_v4 = vld [vmem:[#allocation7 + $0x10] sm:$0xff]  ;;  %v143_v6 = vld [vmem:[#allocation7 + $0x18] sm:$0xff]  ;;  %vm151_vm1 = vcmask 261120   ;;  %v1655_v9 = vmov 1966171168  }
  0x80   :  { %463 = vmatprep.mubr.f32.mxu1 %v1654_v1  ;;  %v1304_v5 = vpack.c.bf16 %v141_v3, %v140_v2  ;;  %v1307_v7 = vpack.c.bf16 %v143_v6, %v142_v4  ;;  %v1844_v8 = vld [vmem:[#allocation2] sm:$0x3]  ;;  %v227_v10 = vunpack.c.l.s4 %v1655_v9  ;;  %v230_v13 = vshrl.u32 %v229_v11, 7  ;;  %v1154_v14 = vld [vmem:[%s2000_s4] ss:$0 sm:$0xff]  ;;  %v1856_v23 = vld [vmem:[#allocation5] sm:$0xff] }
  0x81   :  { %v1859_v26 = vld [vmem:[#allocation5 + $0x8] sm:$0xff]  ;;  %v269_v32 = vand.u32 127, %v229_v11  ;;  %vm278_vm2 = vcmask 1041409   ;;  %vm281_vm3 = vcmask 58368   ;;  %v1656_v40 = vmov 0   ;;  %v380_v63 = vld [vmem:[#allocation8 + $0x8] sm:$0xff] }
  0x82   :  { %1305 = vmatpush3.bf16.msra.mxu0 %v1304_v5  ;;  %v228_v12 = vunpack.c.0.s8 %v227_v10  ;;  %v1854_v20 = vsub.s32 0, %v230_v13  ;;  %1382 = vset.pattern.permute.xlu0 %v1656_v40  ;;  %v1872_v41 = vsub.s32 1, %v230_v13  ;;  %v382_v2 = vld [vmem:[#allocation8 + $0x18] sm:$0xff]  ;;  %v379_v4 = vld [vmem:[#allocation8] sm:$0xff]  ;;  %v381_v5 = vld [vmem:[#allocation8 + $0x10] sm:$0xff]  ;;  %s1657_s27 = smov 64  }
  0x83   :  { %1306 = vmatprep.subr.bf16.mxu0 %v1652_v0  ;;  %v1866_v34 = vsub.s32 %v269_v32, %v230_v13  ;;  %1381 = vset.pattern.permute.xlu1 %v1656_v40  ;;  %v1309_v3 = vpack.c.bf16 %v382_v2, %v380_v63  ;;  %v1311_v6 = vpack.c.bf16 %v381_v5, %v379_v4  ;;  %v386_v9 = vld [vmem:[#allocation8 + $0x38] sm:$0xff]  ;;  %v470_v10 = vld [vmem:[#allocation10] sm:$0xff]  ;;  %s1658_s28 = smov 96   ;;  %vm746_vm5 = vcmask 254976   ;;  %s1660_s23 = smov [#allocation15]  }
  0x84   :  { %v231_v15 = vsub.s32 %v228_v12, %v230_v13  ;;  %v471_v12 = vld [vmem:[#allocation10 + $0x8] sm:$0xff]  ;;  %v383_v13 = vld [vmem:[#allocation8 + $0x20] sm:$0xff]  ;;  %s1125_s1 = sshll.u32 %s1660_s23, 4  ;;  %s1126_s1 = int_to_ptr.vmem [resolvable:$true] %s1125_s1 }
  0x85   :  { %1310 = vmatprep.subr.bf16.mxu1 %v1309_v3  ;;  %s1563_s26 = scalar_lea.vmem %s1126_s1, 32  ;;  %p1568_p1 = scmp.lt.s32.totalorder %s1126_s1, %s1126_s1 }
  0x86   :  { %1308 = vmatpush3.bf16.msra.mxu0 %v1307_v7  ;;  %1312 = vmatpush1.bf16.msra.mxu1 %v1311_v6  ;;  %v384_v7 = vld [vmem:[#allocation8 + $0x28] sm:$0xff]  ;;  %p1564_p0 = scmp.ne.s32.totalorder %s1126_s1, %s1563_s26  ;;  %p1569_p2 = scmp.lt.s32.totalorder %s1563_s26, %s1563_s26 }
  0x87   :  { %1317 = vmatprep.subr.bf16.mxu0 %v1652_v0  ;;  %v1313_v11 = vpack.c.bf16 %v386_v9, %v384_v7 }
  0x88   :  { %p1570_p3 = por %p1569_p2, %p1568_p1 }
  0x89   :  { %1224 = vmatmul.mubr.msk.f32.vlgmr.msra.gmra.mrb[0].mxu0 %vm151_vm1, %v1844_v8  ;;  %1314 = vmatprep.subr.bf16.mxu1 %v1313_v11 }
  0x8a   :  { %1234 = vmatprep.mubr.msk.f32.mxu0 %vm1653_vm0, %v1654_v1  ;;  %p1571_p4 = pnand %p1570_p3, %p1564_p0 }
 0x15c   :  { %v221_v16 = vpop.f32.mrb[0].mxu0 }
 0x15d   :  { %v222_v17 = vadd.f32 %v1154_v14, %v221_v16  ;;  %v1225_v18 = vpop.f32.mrb[1].mxu0  ;;  %v385_v14 = vld [vmem:[#allocation8 + $0x30] sm:$0xff] }
 0x15e   :  { %v1315_v16 = vpack.c.bf16 %v385_v14, %v383_v13  ;;  %v473_v18 = vld [vmem:[#allocation10 + $0x18] sm:$0xff]  ;;  %v748_v14 = vld [vmem:[#allocation11] sm:$0xff] }
 0x15f   :  { %v232_v19 = vrot.slane %v222_v17, %v231_v15  ;;  %v472_v17 = vld [vmem:[#allocation10 + $0x10] sm:$0xff] }
 0x160   :  { %1316 = vmatpush1.bf16.msra.mxu1 %v1315_v16  ;;  %v750_v16 = vld [vmem:[#allocation11 + $0x10] sm:$0xff] }
 0x161   :  { %v233_v21 = vcombine.high %v232_v19, %v232_v19  ;;  %v240_v22 = vrot.slane %v232_v19, %v231_v15  ;;  %v1321_v19 = vpack.c.bf16 %v473_v18, %v472_v17  ;;  %1323 = vmatprep.subr.bf16.mxu1 %v1652_v0  ;;  %v751_v18 = vld [vmem:[#allocation11 + $0x18] sm:$0xff] }
 0x163   :  { %v251_v24 = vrot.slane %v240_v22, %v1854_v20  ;;  %v247_v25 = vrot.slane %v233_v21, %v231_v15  ;;  %v1318_v15 = vpack.c.bf16 %v471_v12, %v470_v10  ;;  %1156 = vmatmul.mubr.msk.f32.vlgmr.msra.gmra.mrb[0].mxu1 %vm151_vm1, %v1844_v8 }
 0x164   :  { %1245 = vmatprep.mubr.msk.f32.mxu1 %vm1653_vm0, %v1654_v1 }
 0x165   :  { %v258_v27 = vmul.f32 %v251_v24, %v1856_v23  ;;  %v255_v28 = vrot.slane %v247_v25, %v1854_v20  ;;  %1319 = vmatpush3.bf16.msra.mxu0 %v1318_v15  ;;  %v749_v15 = vld [vmem:[#allocation11 + $0x8] sm:$0xff] }
 0x166   :  { %1320 = vmatprep.subr.bf16.mxu0 %v1652_v0  ;;  %v1336_v17 = vpack.c.bf16 %v749_v15, %v748_v14  ;;  %v1016_v14 = vld [vmem:[#allocation13 + $0x60] sm:$0xff]  ;;  %v1017_v15 = vld [vmem:[#allocation13 + $0x68] sm:$0xff] }
 0x167   :  { %v260_v29 = vsel %vm151_vm1, %v258_v27, 0.0  ;;  %v259_v30 = vmul.f32 %v255_v28, %v1859_v26 }
 0x168   :  { %261 = vadd.xlane.f32.xlu0 %v260_v29 }
 0x169   :  { %v263_v31 = vsel %vm151_vm1, %v259_v30, 0.0  ;;  %1322 = vmatpush3.bf16.msra.mxu0 %v1321_v19  ;;  %v1339_v19 = vpack.c.bf16 %v751_v18, %v750_v16  ;;  %v1354_v16 = vpack.c.bf16 %v1017_v15, %v1016_v14  ;;  %v1019_v18 = vld [vmem:[#allocation13 + $0x78] sm:$0xff] }
 0x16a   :  { %1329 = vmatprep.subr.bf16.mxu0 %v1652_v0 }
 0x16c   :  { %264 = vadd.xlane.f32.xlu0 %v263_v31 }
 0x1f5   :  { %v262_v33 = vpop.xlane.xlu0 %261 }
 0x1f6   :  { %v273_v36 = vrot.slane %v262_v33, %v1866_v34 }
 0x1f9   :  { %v265_v35 = vpop.xlane.xlu0 %264 }
 0x1fa   :  { %v277_v37 = vrot.slane %v265_v35, %v1866_v34 }
 0x1fc   :  { %v279_v38 = vsel %vm278_vm2, %v277_v37, %v273_v36 }
 0x1fd   :  { %v282_v39 = vsel %vm281_vm3, %v279_v38, -inf  ;;  %v363_v38 = vrot.slane %v1844_v8, 1 }
 0x1fe   :  { %283 = vmax.xlane.f32.xlu1 %v282_v39 }
 0x28b   :  { %v284_v42 = vpop.xlane.xlu1 %283 }
 0x28c   :  { %v289_v43 = vrot.slane %v284_v42, %v1854_v20  ;;  %v293_v44 = vrot.slane %v284_v42, %v1872_v41 }
 0x28e   :  { %v296_v45 = vsub.f32 %v262_v33, %v289_v43  ;;  %v297_v46 = vsub.f32 %v265_v35, %v293_v44 }
 0x290   :  { %v298_v47 = vmul.f32 1.442695, %v296_v45  ;;  %v300_v48 = vmul.f32 1.442695, %v297_v46 }
 0x292   :  { %1383 = vpow2.f32 %v298_v47 }
 0x293   :  { %1385 = vpow2.f32 %v300_v48  ;;  %v465_v48 = vpop.f32.mrb[0].mxu1 }
 0x29c   :  { %v1384_v49 = vpop.eup %1383 }
 0x29d   :  { %v1386_v50 = vpop.eup %1385  ;;  %305 = vperm.xlu1 %1381, %v1384_v49  }
 0x29e   :  { %308 = vperm.xlu0 %1382, %v1386_v50  }
 0x31c   :  { %v306_v51 = vpop.permute.xlu1 %305 }
 0x31d   :  { %v309_v52 = vpop.permute.xlu0 %308  ;;  %v313_v53 = vrot.slane %v306_v51, %v1866_v34  ;;  %v558_v51 = vld [vmem:[#allocation13 + $0x8] sm:$0xff] }
 0x31e   :  { %v317_v54 = vrot.slane %v309_v52, %v1866_v34 }
 0x320   :  { %v318_v55 = vsel %vm278_vm2, %v317_v54, %v313_v53  ;;  %v559_v53 = vld [vmem:[#allocation13 + $0x10] sm:$0xff]  ;;  %v560_v54 = vld [vmem:[#allocation13 + $0x18] sm:$0xff] }
 0x321   :  { %v320_v56 = vsel %vm281_vm3, %v318_v55, 0.0  ;;  %v648_v55 = vld [vmem:[#allocation13 + $0x20] sm:$0xff] }
 0x322   :  { %321 = vadd.xlane.f32.xlu1 %v320_v56  ;;  %v649_v56 = vld [vmem:[#allocation13 + $0x28] sm:$0xff] }
 0x3af   :  { %v322_v57 = vpop.xlane.xlu1 %321 }
 0x3b0   :  { %1387 = vrcp.f32 %v322_v57  ;;  %v650_v57 = vld [vmem:[#allocation13 + $0x30] sm:$0xff] }
 0x3ba   :  { %v1388_v58 = vpop.eup %1387 }
 0x3bb   :  { %v332_v59 = vrot.slane %v1388_v58, %v1872_v41  ;;  %v328_v61 = vrot.slane %v1388_v58, %v1854_v20  ;;  %v1330_v58 = vpack.c.bf16 %v649_v56, %v648_v55 }
 0x3bd   :  { %v336_v60 = vmul.f32 %v1386_v50, %v332_v59  ;;  %v335_v62 = vmul.f32 %v1384_v49, %v328_v61  ;;  %v1906_v49 = vpop.f32.mrb[1].mxu1  ;;  %v557_v50 = vld [vmem:[#allocation13] sm:$0xff]  ;;  %v651_v59 = vld [vmem:[#allocation13 + $0x38] sm:$0xff] }
 0x3be   :  { %v1324_v52 = vpack.c.bf16 %v558_v51, %v557_v50  ;;  %v1915_v61 = vld [vmem:[%s2002_s6] sm:$0x3]  ;;  %s1659_s6 = smov 32  }
 0x3bf   :  { %344 = vperm.xlu0 %1382, %v336_v60   ;;  %v1333_v60 = vpack.c.bf16 %v651_v59, %v650_v57 }
 0x3c0   :  { %1325 = vmatpush3.bf16.msra.mxu1 %v1324_v52 }
 0x3c1   :  { %1326 = vmatprep.subr.bf16.mxu1 %v1652_v0 }
 0x3c3   :  { %339 = vperm.xlu0 %1382, %v335_v62   ;;  %v392_v62 = vrot.slane %v1915_v61, %v1854_v20 }
 0x3c5   :  { %v466_v63 = vadd.f32 %v465_v48, %v392_v62  ;;  %v840_v48 = vld [vmem:[#allocation13 + $0x58] sm:$0xff]  ;;  %v932_v62 = vld [vmem:[#allocation11 + $0x28] sm:$0xff] }
 0x43e   :  { %v345_v21 = vpop.permute.xlu0 %344 }
 0x43f   :  { %v348_v22 = vmul.f32 %v345_v21, %v1859_v26  ;;  %v375_v28 = vrot.slane %v345_v21, %v1866_v34  ;;  %v1159_v21 = vld [vmem:[%s2006_s10] ss:$0 sm:$0xff] }
 0x441   :  { %v356_v24 = vsel %vm151_vm1, %v348_v22, 0.0 }
 0x442   :  { %v357_v25 = vrot.slane %v356_v24, 4  ;;  %v340_v27 = vpop.permute.xlu0 %339 }
 0x443   :  { %v347_v29 = vmul.f32 %v340_v27, %v1856_v23  ;;  %v371_v30 = vrot.slane %v340_v27, %v1866_v34  ;;  %v1162_v27 = vld [vmem:[%s2006_s10 + $0x1] ss:$0 sm:$0xff] }
 0x444   :  { %v358_v31 = vadd.f32 %v357_v25, %v356_v24 }
 0x445   :  { %v349_v32 = vsel %vm151_vm1, %v347_v29, 0.0  ;;  %v376_v33 = vsel %vm278_vm2, %v375_v28, %v371_v30 }
 0x446   :  { %v359_v35 = vrot.slane %v358_v31, 2  ;;  %v350_v36 = vrot.slane %v349_v32, 4  ;;  %378 = vst.msk [vmem:[#allocation15] sm:$0x3] %vm281_vm3, %v376_v33 }
 0x448   :  { %v360_v26 = vadd.f32 %v359_v35, %v358_v31  ;;  %v351_v37 = vadd.f32 %v350_v36, %v349_v32 }
 0x44a   :  { %v361_v39 = vrot.slane %v360_v26, 1  ;;  %v352_v40 = vrot.slane %v351_v37, 2 }
 0x44c   :  { %v362_v42 = vadd.f32 %v361_v39, %v360_v26  ;;  %v353_v43 = vadd.f32 %v352_v40, %v351_v37 }
 0x44e   :  { %v354_v23 = vrot.slane %v353_v43, 1  ;;  %v367_v44 = vadd.f32 %v363_v38, %v362_v42  ;;  %v139_v38 = vld [vmem:[%s1998_s2] sm:$0x3] }
 0x450   :  { %v355_v34 = vadd.f32 %v354_v23, %v353_v43  ;;  %v476_v46 = vrot.slane %v367_v44, 7  ;;  %v837_v44 = vld [vmem:[#allocation13 + $0x40] sm:$0xff] }
 0x452   :  { %v366_v45 = vadd.f32 %v355_v34, %v1844_v8  ;;  %v1327_v8 = vpack.c.bf16 %v560_v54, %v559_v53  ;;  %v838_v34 = vld [vmem:[#allocation13 + $0x48] sm:$0xff] }
 0x454   :  { %v1900_v47 = vsel %vm278_vm2, %v476_v46, %v366_v45  ;;  %1328 = vmatpush3.bf16.msra.mxu1 %v1327_v8  ;;  %v1342_v45 = vpack.c.bf16 %v838_v34, %v837_v44  ;;  %v839_v46 = vld [vmem:[#allocation13 + $0x50] sm:$0xff] }
 0x455   :  { %1235 = vmatmul.mubr.msk.f32.vlgmr.msra.gmra.mrb[2].mxu0 %vm151_vm1, %v1900_v47  ;;  %1335 = vmatprep.subr.bf16.mxu1 %v1652_v0  ;;  %v1345_v50 = vpack.c.bf16 %v840_v48, %v839_v46 }
 0x456   :  { %1256 = vmatprep.mubr.msk.f32.mxu0 %vm1653_vm0, %v1654_v1  ;;  %1331 = vmatpush3.bf16.msra.mxu0 %v1330_v58 }
 0x457   :  { %1332 = vmatprep.subr.bf16.mxu0 %v1652_v0 }
 0x45a   :  { %1334 = vmatpush3.bf16.msra.mxu0 %v1333_v60  ;;  %v931_v60 = vld [vmem:[#allocation11 + $0x20] sm:$0xff] }
 0x45b   :  { %1341 = vmatprep.subr.bf16.mxu0 %v1652_v0 }
 0x528   :  { %v546_v2 = vpop.f32.mrb[2].mxu0 }
 0x529   :  { %v547_v3 = vadd.f32 %v546_v2, %v466_v63  ;;  %v1236_v4 = vpop.f32.mrb[3].mxu0  ;;  %v1348_v2 = vpack.c.bf16 %v932_v62, %v931_v60 }
 0x52b   :  { %v551_v5 = vmul.f32 1.442695, %v547_v3  ;;  %vm550_vm4 = vcmp.gt.f32.partialorder %v547_v3, 0.0 }
 0x52d   :  { %1389 = vpow2.f32 %v551_v5  ;;  %v1167_v5 = vld [vmem:[%s2006_s10 + $0x2] ss:$0 sm:$0xff] }
 0x537   :  { %v1390_v6 = vpop.eup %1389 }
 0x538   :  { %v1158_v7 = vadd.f32 -1.0, %v1390_v6 }
 0x53a   :  { %v554_v9 = vmul.f32 1.6732632, %v1158_v7 }
 0x53c   :  { %v555_v10 = vsel %vm550_vm4, %v547_v3, %v554_v9  ;;  %v934_v3 = vld [vmem:[#allocation11 + $0x38] sm:$0xff] }
 0x53d   :  { %v556_v11 = vmul.f32 1.050701, %v555_v10 }
 0x53f   :  { %741 = vrot.lane.b32.xlu0 %v556_v11, %s1657_s27  ;;  %660 = vrot.lane.b32.xlu1 %v556_v11, %s1658_s28 }
 0x540   :  { %1246 = vmatmul.mubr.msk.f32.vlgmr.msra.gmra.mrb[2].mxu1 %vm151_vm1, %v556_v11 }
 0x541   :  { %1267 = vmatprep.mubr.msk.f32.mxu1 %vm1653_vm0, %v1654_v1  ;;  %1337 = vmatpush3.bf16.msra.mxu1 %v1336_v17  ;;  %v1018_v17 = vld [vmem:[#allocation13 + $0x70] sm:$0xff] }
 0x542   :  { %1338 = vmatprep.subr.bf16.mxu1 %v1652_v0 }
 0x543   :  { %753 = vrot.lane.b32.xlu0 %v466_v63, %s1659_s6  ;;  %v933_v63 = vld [vmem:[#allocation11 + $0x30] sm:$0xff] }
 0x544   :  { %v1351_v4 = vpack.c.bf16 %v934_v3, %v933_v63 }
 0x545   :  { %1340 = vmatpush3.bf16.msra.mxu1 %v1339_v19  ;;  %v1357_v19 = vpack.c.bf16 %v1019_v18, %v1018_v17 }
 0x546   :  { %1347 = vmatprep.subr.bf16.mxu1 %v1652_v0 }
 0x5b1   :  { %v661_v20 = vpop.permute.xlu1 %660  ;;  %v742_v40 = vpop.permute.xlu0 %741 }
 0x5b2   :  { %1257 = vmatmul.mubr.msk.f32.vlgmr.msra.gmra.mrb[4].mxu0 %vm151_vm1, %v661_v20 }
 0x5b3   :  { %1278 = vmatprep.mubr.msk.f32.mxu0 %vm1653_vm0, %v1654_v1  ;;  %1343 = vmatpush3.bf16.msra.mxu0 %v1342_v45 }
 0x5b4   :  { %1344 = vmatprep.subr.bf16.mxu0 %v1652_v0 }
 0x5b5   :  { %v754_v51 = vpop.permute.xlu0 %753 }
 0x5b7   :  { %1346 = vmatpush3.bf16.msra.mxu0 %v1345_v50 }
 0x5b8   :  { %1353 = vmatprep.subr.bf16.mxu0 %v1652_v0 }
 0x613   :  { %v637_v12 = vpop.f32.mrb[2].mxu1 }
 0x614   :  { %v1247_v13 = vpop.f32.mrb[3].mxu1  ;;  %v638_v22 = vadd.f32 %v1159_v21, %v637_v12  ;;  %v396_v21 = vrot.slane %v1915_v61, %v1872_v41 }
 0x616   :  { %v641_v24 = vsub.f32 0.0, %v638_v22  ;;  %v468_v22 = vadd.f32 %v1906_v49, %v396_v21 }
 0x618   :  { %v642_v25 = vmul.f32 1.442695, %v641_v24 }
 0x61a   :  { %1391 = vpow2.f32 %v642_v25 }
 0x624   :  { %v1392_v33 = vpop.eup %1391 }
 0x625   :  { %v644_v35 = vadd.f32 1.0, %v1392_v33 }
 0x685   :  { %v730_v28 = vpop.f32.mrb[4].mxu0 }
 0x686   :  { %v731_v29 = vadd.f32 %v1162_v27, %v730_v28  ;;  %v1258_v30 = vpop.f32.mrb[5].mxu0 }
 0x688   :  { %v734_v31 = vsub.f32 0.0, %v731_v29 }
 0x68a   :  { %v735_v32 = vmul.f32 1.442695, %v734_v31 }
 0x68c   :  { %1393 = vpow2.f32 %v735_v32 }
 0x68d   :  { %1395 = vrcp.f32 %v644_v35 }
 0x696   :  { %v1394_v36 = vpop.eup %1393 }
 0x697   :  { %v737_v26 = vadd.f32 1.0, %v1394_v36  ;;  %v1396_v37 = vpop.eup %1395 }
 0x698   :  { %v744_v43 = vmul.f32 %v1396_v37, %v742_v40 }
 0x699   :  { %1397 = vrcp.f32 %v737_v26 }
 0x6a3   :  { %v1398_v39 = vpop.eup %1397 }
 0x6a4   :  { %v740_v42 = vmul.f32 %v1398_v39, %v139_v38 }
 0x6a6   :  { %v745_v23 = vadd.f32 %v744_v43, %v740_v42 }
 0x6a8   :  { %1268 = vmatmul.mubr.msk.f32.vlgmr.msra.gmra.mrb[4].mxu1 %vm151_vm1, %v745_v23  ;;  %747 = vst.msk [vmem:[#allocation17] sm:$0x3] %vm746_vm5, %v745_v23 }
 0x6a9   :  { %1289 = vmatprep.mubr.msk.f32.mxu1 %vm1653_vm0, %v1654_v1  ;;  %1349 = vmatpush3.bf16.msra.mxu1 %v1348_v2 }
 0x6aa   :  { %1350 = vmatprep.subr.bf16.mxu1 %v1652_v0 }
 0x6ad   :  { %1352 = vmatpush3.bf16.msra.mxu1 %v1351_v4 }
 0x77b   :  { %v825_v52 = vpop.f32.mrb[4].mxu1 }
 0x77c   :  { %v826_v53 = vadd.f32 %v825_v52, %v754_v51  ;;  %v1269_v54 = vpop.f32.mrb[5].mxu1 }
 0x77e   :  { %v830_v8 = vmul.f32 1.442695, %v826_v53  ;;  %vm829_vm6 = vcmp.gt.f32.partialorder %v826_v53, 0.0 }
 0x780   :  { %1399 = vpow2.f32 %v830_v8 }
 0x78a   :  { %v1400_v55 = vpop.eup %1399 }
 0x78b   :  { %v1165_v56 = vadd.f32 -1.0, %v1400_v55 }
 0x78d   :  { %v833_v57 = vmul.f32 1.6732632, %v1165_v56 }
 0x78f   :  { %v834_v58 = vsel %vm829_vm6, %v826_v53, %v833_v57 }
 0x790   :  { %v835_v59 = vmul.f32 1.050701, %v834_v58 }
 0x792   :  { %1279 = vmatmul.mubr.msk.f32.vlgmr.msra.gmra.mrb[6].mxu0 %vm151_vm1, %v835_v59 }
 0x793   :  { %1300 = vmatprep.mubr.msk.f32.mxu0 %vm1653_vm0, %v1654_v1  ;;  %1355 = vmatpush3.bf16.msra.mxu0 %v1354_v16 }
 0x794   :  { %1356 = vmatprep.subr.bf16.mxu0 %v1652_v0 }
 0x797   :  { %1358 = vmatpush3.bf16.msra.mxu0 %v1357_v19 }
 0x865   :  { %v918_v6 = vpop.f32.mrb[6].mxu0 }
 0x866   :  { %v919_v7 = vadd.f32 %v1167_v5, %v918_v6  ;;  %v1280_v9 = vpop.f32.mrb[7].mxu0 }
 0x868   :  { %v922_v10 = vsub.f32 0.0, %v919_v7 }
 0x86a   :  { %v923_v11 = vmul.f32 1.442695, %v922_v10 }
 0x86c   :  { %1401 = vpow2.f32 %v923_v11 }
 0x876   :  { %v1402_v1 = vpop.eup %1401 }
 0x877   :  { %v925_v20 = vadd.f32 1.0, %v1402_v1 }
 0x879   :  { %1403 = vrcp.f32 %v925_v20 }
 0x883   :  { %v1404_v12 = vpop.eup %1403 }
 0x884   :  { %v929_v13 = vmul.f32 %v1404_v12, %v1900_v47 }
 0x886   :  { %1290 = vmatmul.mubr.msk.f32.vlgmr.msra.gmra.mrb[6].mxu1 %vm151_vm1, %v929_v13 }
 0x959   :  { %v1004_v24 = vpop.f32.mrb[6].mxu1 }
 0x95a   :  { %v1005_v25 = vadd.f32 %v1004_v24, %v468_v22  ;;  %v1291_v47 = vpop.f32.mrb[7].mxu1 }
 0x95c   :  { %v1009_v27 = vmul.f32 1.442695, %v1005_v25  ;;  %vm1008_vm7 = vcmp.gt.f32.partialorder %v1005_v25, 0.0 }
 0x95e   :  { %1405 = vpow2.f32 %v1009_v27 }
 0x968   :  { %v1406_v28 = vpop.eup %1405 }
 0x969   :  { %v1170_v29 = vadd.f32 -1.0, %v1406_v28 }
 0x96b   :  { %v1012_v30 = vmul.f32 1.6732632, %v1170_v29 }
 0x96d   :  { %v1013_v31 = vsel %vm1008_vm7, %v1005_v25, %v1012_v30 }
 0x96e   :  { %v1014_v0 = vmul.f32 1.050701, %v1013_v31 }
 0x970   :  { %1301 = vmatmul.mubr.msk.f32.vlgmr.msra.gmra.mrb[8].mxu0 %vm151_vm1, %v1014_v0 }
 0x971   :  { %1574 = shalt.err (!%p1571_p4)
}
 0x972   :  { %s1575_s20 = scalar_lea.hbm %s2008_s12, 32 }
 0x973   :  { %p1576_p5 = scmp.ne.s32.totalorder %s2008_s12, %s1575_s20  ;;  %p1579_p6 = scmp.lt.u32.totalorder %s1575_s20, %s2008_s12 }
 0x975   :  { %p1581_p7 = pnand %p1579_p6, %p1576_p5 }
 0x977   :  { %1584 = shalt.err (!%p1581_p7)
}
 0x978   :  { %1128 = dma.vmem_to_hbm [thread:$0]  %s1126_s1, 32, %s2008_s12, [#allocation16]  }
 0x979   :  { %s1661_s9 = smov [#allocation17]  }
 0x97a   :  { %s1135_s18 = sshll.u32 %s1661_s9, 4  ;;  %s1136_s18 = int_to_ptr.vmem [resolvable:$true] %s1135_s18 }
 0x97b   :  { %s1585_s4 = scalar_lea.vmem %s1136_s18, 32  ;;  %p1590_p9 = scmp.lt.s32.totalorder %s1136_s18, %s1136_s18 }
 0x97c   :  { %p1586_p8 = scmp.ne.s32.totalorder %s1136_s18, %s1585_s4  ;;  %p1591_p10 = scmp.lt.s32.totalorder %s1585_s4, %s1585_s4 }
 0x97e   :  { %p1592_p11 = por %p1591_p10, %p1590_p9 }
 0x980   :  { %p1593_p12 = pnand %p1592_p11, %p1586_p8 }
 0x982   :  { %1596 = shalt.err (!%p1593_p12)
}
 0x983   :  { %s1597_s28 = scalar_lea.hbm %s2009_s13, 32 }
 0x984   :  { %p1598_p13 = scmp.ne.s32.totalorder %s2009_s13, %s1597_s28  ;;  %p1601_p0 = scmp.lt.u32.totalorder %s1597_s28, %s2009_s13 }
 0x986   :  { %p1603_p1 = pnand %p1601_p0, %p1598_p13 }
 0x988   :  { %1606 = shalt.err (!%p1603_p1)
}
 0x989   :  { %1138 = dma.vmem_to_hbm [thread:$0]  %s1136_s18, 32, %s2009_s13, [#allocation16]   ;;  %v1172_v41 = vld [vmem:[%s2006_s10 + $0x3] ss:$0 sm:$0xff] }
 0x98a   :  { %s1662_s2 = smov [#allocation14]  }
 0x98b   :  { %s1115_s30 = sshll.u32 %s1662_s2, 4  ;;  %s1116_s30 = int_to_ptr.vmem [resolvable:$true] %s1115_s30 }
 0x98c   :  { %s1607_s13 = scalar_lea.vmem %s1116_s30, 32  ;;  %p1612_p3 = scmp.lt.s32.totalorder %s1116_s30, %s1116_s30 }
 0x98d   :  { %p1608_p2 = scmp.ne.s32.totalorder %s1116_s30, %s1607_s13  ;;  %p1613_p4 = scmp.lt.s32.totalorder %s1607_s13, %s1607_s13 }
 0x98f   :  { %p1614_p5 = por %p1613_p4, %p1612_p3 }
 0x991   :  { %p1615_p6 = pnand %p1614_p5, %p1608_p2 }
 0xa43   :  { %v1097_v49 = vpop.f32.mrb[8].mxu0 }
 0xa44   :  { %v1098_v61 = vadd.f32 %v1172_v41, %v1097_v49  ;;  %v1302_v32 = vpop.f32.mrb[9].mxu0 }
 0xa46   :  { %v1102_v33 = vmul.f32 1.442695, %v1098_v61  ;;  %vm1101_vm8 = vcmp.gt.f32.partialorder %v1098_v61, 0.0 }
 0xa48   :  { %1407 = vpow2.f32 %v1102_v33 }
 0xa52   :  { %v1408_v35 = vpop.eup %1407 }
 0xa53   :  { %v1174_v36 = vadd.f32 -1.0, %v1408_v35 }
 0xa55   :  { %v1105_v26 = vmul.f32 1.6732632, %v1174_v36 }
 0xa57   :  { %v1106_v37 = vsel %vm1101_vm8, %v1098_v61, %v1105_v26 }
 0xa58   :  { %v1107_v38 = vmul.f32 1.050701, %v1106_v37 }
 0xa5a   :  { %1108 = vst.msk [vmem:[#allocation14] sm:$0x3] %vm746_vm5, %v1107_v38 }
 0xa5b   :  { %1618 = shalt.err (!%p1615_p6)
}
 0xa5c   :  { %s1619_s1 = scalar_lea.hbm %s2007_s11, 32 }
 0xa5d   :  { %p1620_p7 = scmp.ne.s32.totalorder %s2007_s11, %s1619_s1  ;;  %p1623_p8 = scmp.lt.u32.totalorder %s1619_s1, %s2007_s11 }
 0xa5f   :  { %p1625_p9 = pnand %p1623_p8, %p1620_p7 }
 0xa61   :  { %1628 = shalt.err (!%p1625_p9)
}
 0xa62   :  { %1118 = dma.vmem_to_hbm [thread:$0]  %s1116_s30, 32, %s2007_s11, [#allocation4]  }
 0xa63   :  { %1637 = dma.done.wait [#allocation4], 32  }
 0xa64   :  { %1638 = vsyncadd [#allocation4], 4294967264 }
 0xa65   :  { %1639 = dma.done.wait [#allocation16], 64  }
 0xa66   :  { %1640 = vsyncadd [#allocation16], 4294967232 }
 0xa67   :  { %1148 = vsyncpa [#allocation3], 1 }
 0xa68   :  { %1149 = vsyncpa [#allocation6], 1 }
 0xa69   :  { %1150 = vsyncpa [#allocation9], 1 }
 0xa6a   :  { %1151 = vsyncpa [#allocation12], 1 }
 0xa6b   :  { %1152 = vsyncpa [#allocation4], 1 }
 0xa6c   :  { %1153 = vsyncpa [#allocation16], 1 }

</bundles_post_ra>
